<compile_context>
chip_gen: v7x
topology: tpu7x:2x2x1
jax: 0.10.0
libtpu: 0.0.40
codegen_flags: <defaults>
</compile_context>

<pallas_src>
import functools

import jax
import jax.numpy as jnp
import numpy as np
from jax import lax
from jax.experimental import pallas as pl
from jax.experimental.pallas import tpu as pltpu

GAMMA = 2.0
ALPHA = 0.25

_LANES = 128
_SUBLANES = 8
_MAX_BLOCK_ROWS = 4096                 # (4096,128) f32 = 2 MiB per input per buffer
_VMEM_LIMIT_BYTES = 32 * 1024 * 1024   # 4 inputs x 2 buffers x 2 MiB = 16 MiB + slack


def _ceil_div(a, b):
    return -(-a // b)


def _round_up(a, b):
    return _ceil_div(a, b) * b


def _detect_num_tensorcores():
    """Best-effort TensorCore count (2 on v7x); falls back to 1 on v5e/v6e."""
    try:
        info = pltpu.get_tpu_info()
    except Exception:
        return 1
    for name in ("num_cores", "core_count", "num_tensorcores",
                 "tensorcores_per_chip", "cores_per_chip"):
        val = getattr(info, name, None)
        if isinstance(val, int) and val > 0:
            return val
    return 1


def _focal_loss_kernel(i0_ref, i1_ref, t0_ref, t1_ref, out_ref, *,
                       gamma, alpha, block_rows, chunk_rows, steps_per_core,
                       n_elems, need_mask):
    c = pl.program_id(0)       # TensorCore axis (CORE_PARALLEL on multi-core chips)
    step = pl.program_id(1)    # reduction axis (arbitrary)
    nchunks = block_rows // chunk_rows

    @pl.when(step == 0)
    def _():
        out_ref[...] = jnp.zeros_like(out_ref)

    def pair_losses(i0, i1, t0, t1, valid):
        # gamma == 2 (module default): plain VPU square instead of an EUP pow
        # (float-exponent pow lowers to exp(g*log(x)) on the single EUP port).
        if gamma == 2:
            pow0 = i0 * i0
            om1 = 1.0 - i1
            pow1 = om1 * om1
        else:
            pow0 = i0 ** gamma
            pow1 = (1.0 - i1) ** gamma
        l0 = (-(1.0 - alpha)) * pow0 * (1.0 - t0) * jnp.log(1.0 - i0)
        l1 = (-alpha) * pow1 * t1 * jnp.log(i1)
        if valid is not None:
            # Select AFTER the pow/log: garbage lanes (uninitialized / padded
            # data) may be NaN or Inf, but the select drops them before they
            # ever reach the accumulator.
            l0 = jnp.where(valid, l0, 0.0)
            l1 = jnp.where(valid, l1, 0.0)
        # Reduce (chunk_rows,128) -> (8,128): vreg-aligned groups, pure VPU adds.
        s0 = l0.reshape(chunk_rows // _SUBLANES, _SUBLANES, _LANES).sum(axis=0)
        s1 = l1.reshape(chunk_rows // _SUBLANES, _SUBLANES, _LANES).sum(axis=0)
        return s0, s1

    def accumulate(masked):
        if masked:
            block_start = (c * steps_per_core + step) * (block_rows * _LANES)
            local = (lax.broadcasted_iota(jnp.int32, (chunk_rows, _LANES), 0) * _LANES
                     + lax.broadcasted_iota(jnp.int32, (chunk_rows, _LANES), 1))

        def chunk_body(ci, carry):
            a0, a1 = carry
            r = pl.multiple_of(ci * chunk_rows, chunk_rows)
            i0 = i0_ref[pl.ds(r, chunk_rows), :].astype(jnp.float32)
            i1 = i1_ref[pl.ds(r, chunk_rows), :].astype(jnp.float32)
            t0 = t0_ref[pl.ds(r, chunk_rows), :].astype(jnp.float32)
            t1 = t1_ref[pl.ds(r, chunk_rows), :].astype(jnp.float32)
            if masked:
                valid = (block_start + r * _LANES + local) < n_elems
            else:
                valid = None
            s0, s1 = pair_losses(i0, i1, t0, t1, valid)
            return a0 + s0, a1 + s1

        zero = jnp.zeros((_SUBLANES, _LANES), jnp.float32)
        a0, a1 = lax.fori_loop(0, nchunks, chunk_body, (zero, zero))
        out_ref[0, 0] += a0
        out_ref[0, 1] += a1

    if not need_mask:
        accumulate(masked=False)
    else:
        # Only the final logical block contains elements past n; keep the
        # interior blocks entirely mask-free (reviewer's v7x VALU-margin point).
        is_last = jnp.logical_and(c == pl.num_programs(0) - 1,
                                  step == pl.num_programs(1) - 1)

        @pl.when(jnp.logical_not(is_last))
        def _():
            accumulate(masked=False)

        @pl.when(is_last)
        def _():
            accumulate(masked=True)


def _as_rows(x):
    """View x as (rows, 128).  Zero-copy whenever numel % 128 == 0."""
    flat = jnp.ravel(x)
    n = flat.shape[0]
    rows = _ceil_div(n, _LANES)
    if rows * _LANES != n:
        # Rare ragged-lane case (n % 128 != 0): a (rows,128) view needs a pad.
        # The pad value is irrelevant — those elements are masked in-kernel.
        flat = jnp.pad(flat, (0, rows * _LANES - n))
    return flat.reshape(rows, _LANES)


def focal_loss(input0, input1, target0, target1, gamma=GAMMA, alpha=ALPHA,
               num_cores=None, verbose=True):
    n = int(np.prod(input0.shape))
    assert int(np.prod(input1.shape)) == n
    assert int(np.prod(target0.shape)) == n
    assert int(np.prod(target1.shape)) == n

    # No dtype casting here: narrow inputs (e.g. bf16) stream as-is and are
    # upcast in-register inside the kernel.
    i0 = _as_rows(input0)
    i1 = _as_rows(input1)
    t0 = _as_rows(target0)
    t1 = _as_rows(target1)
    rows = i0.shape[0]

    if num_cores is None:
        num_cores = _detect_num_tensorcores()
    num_cores = max(1, int(num_cores))

    # block_rows is always a multiple of 8 (partial / over-sized last block is
    # covered by the in-kernel element mask).
    block_rows = min(_MAX_BLOCK_ROWS, _round_up(rows, _SUBLANES))
    if num_cores > 1:
        # Make sure there is at least one block per core.
        block_rows = min(block_rows,
                         _round_up(_ceil_div(rows, num_cores), _SUBLANES))
    num_blocks = _ceil_div(rows, block_rows)
    num_cores = max(1, min(num_cores, num_blocks))
    if num_cores > 1 and num_blocks % num_cores != 0:
        # Shrink the block so blocks divide evenly across cores (no clamped
        # duplicate blocks -> no wasted HBM reads); otherwise fall back to 1.
        target_nb = _round_up(num_blocks, num_cores)
        adj = min(_MAX_BLOCK_ROWS,
                  _round_up(_ceil_div(rows, target_nb), _SUBLANES))
        if _ceil_div(rows, adj) % num_cores == 0:
            block_rows = adj
            num_blocks = _ceil_div(rows, adj)
        else:
            num_cores = 1
    steps_per_core = num_blocks // num_cores

    need_mask = num_blocks * block_rows * _LANES > n
    chunk_rows = 32 if block_rows % 32 == 0 else (
        16 if block_rows % 16 == 0 else _SUBLANES)

    in_spec = pl.BlockSpec((block_rows, _LANES),
                           lambda c, i: (c * steps_per_core + i, 0))
    out_spec = pl.BlockSpec((1, 2, _SUBLANES, _LANES),
                            lambda c, i: (c, 0, 0, 0))

    core_sem = pltpu.CORE_PARALLEL if num_cores > 1 else pltpu.ARBITRARY

    partials = pl.pallas_call(
        functools.partial(_focal_loss_kernel, gamma=gamma, alpha=alpha,
                          block_rows=block_rows, chunk_rows=chunk_rows,
                          steps_per_core=steps_per_core, n_elems=n,
                          need_mask=need_mask),
        out_shape=jax.ShapeDtypeStruct((num_cores, 2, _SUBLANES, _LANES),
                                       jnp.float32),
        grid_spec=pltpu.PrefetchScalarGridSpec(
            num_scalar_prefetch=0,
            grid=(num_cores, steps_per_core),
            in_specs=[in_spec, in_spec, in_spec, in_spec],
            out_specs=out_spec,
        ),
        compiler_params=pltpu.CompilerParams(
            dimension_semantics=(core_sem, pltpu.ARBITRARY),
            vmem_limit_bytes=_VMEM_LIMIT_BYTES),
    )(i0, i1, t0, t1)

    loss0_sum = jnp.sum(partials[:, 0])
    loss1_sum = jnp.sum(partials[:, 1])
    if verbose:
        # Mirrors the PyTorch module's per-call print; disable in hot loops.
        jax.debug.print("loss0  {} loss1  {}", loss0_sum, loss1_sum)
    return loss0_sum + loss1_sum


def _reference(input0, input1, target0, target1, gamma=GAMMA, alpha=ALPHA):
    i0 = input0.astype(jnp.float32)
    i1 = input1.astype(jnp.float32)
    t0 = target0.astype(jnp.float32)
    t1 = target1.astype(jnp.float32)
    loss0 = -(1.0 - alpha) * (i0 ** gamma) * (1.0 - t0) * jnp.log(1.0 - i0)
    loss1 = -alpha * ((1.0 - i1) ** gamma) * t1 * jnp.log(i1)
    return jnp.sum(loss0) + jnp.sum(loss1)


if __name__ == "__main__":
    key = jax.random.PRNGKey(0)
    k0, k1, k2, k3 = jax.random.split(key, 4)

    shape = (2, 4, 16, 16)  # NCHW, as in PyTorch conv-style inputs
    # Predicted probabilities in (0, 1), bounded away from {0, 1} for finite log.
    input0 = jax.random.uniform(k0, shape, jnp.float32, 0.05, 0.95)
    input1 = jax.random.uniform(k1, shape, jnp.float32, 0.05, 0.95)
    # Binary targets.
    target0 = jax.random.bernoulli(k2, 0.5, shape).astype(jnp.float32)
    target1 = jax.random.bernoulli(k3, 0.5, shape).astype(jnp.float32)

    loss = focal_loss(input0, input1, target0, target1)
    jax.block_until_ready(loss)

    ref = jax.block_until_ready(_reference(input0, input1, target0, target1))
    np.testing.assert_allclose(np.asarray(loss), np.asarray(ref),
                               rtol=1e-5, atol=1e-5)
    print("KERNEL_OK")
</pallas_src>

<mosaic_0001>
module attributes {stable_mosaic.version = 11 : i64} {
  func.func @_focal_loss_kernel(%arg0: i32, %arg1: i32, %arg2: memref<16x128xf32, #tpu.memory_space<vmem>>, %arg3: memref<16x128xf32, #tpu.memory_space<vmem>>, %arg4: memref<16x128xf32, #tpu.memory_space<vmem>>, %arg5: memref<16x128xf32, #tpu.memory_space<vmem>>, %arg6: memref<1x2x8x128xf32, #tpu.memory_space<vmem>>) attributes {dimension_semantics = [#tpu.dimension_semantics<arbitrary>, #tpu.dimension_semantics<arbitrary>], iteration_bounds = array<i64: 1, 1>, scalar_prefetch = 0 : i64, scratch_operands = 0 : i64, tpu.core_type = #tpu.core_type<tc>, window_params = [{transform_indices = @transform_0, window_bounds = array<i64: 16, 128>}, {transform_indices = @transform_1, window_bounds = array<i64: 16, 128>}, {transform_indices = @transform_2, window_bounds = array<i64: 16, 128>}, {transform_indices = @transform_3, window_bounds = array<i64: 16, 128>}, {transform_indices = @transform_4, window_bounds = array<i64: 1, 2, 8, 128>}]} {
    %c0_i32 = arith.constant 0 : i32
    %0 = arith.cmpi eq, %arg1, %c0_i32 : i32
    %1 = arith.extui %0 : i1 to i32
    %c0_i32_0 = arith.constant 0 : i32
    %2 = arith.cmpi ne, %1, %c0_i32_0 : i32
    scf.if %2 {
      %cst_27 = arith.constant 0.000000e+00 : f32
      %50 = vector.broadcast %cst_27 : f32 to vector<1x2x8x128xf32>
      %c0_28 = arith.constant 0 : index
      %c0_29 = arith.constant 0 : index
      %c0_30 = arith.constant 0 : index
      %c0_31 = arith.constant 0 : index
      %51 = vector.load %arg6[%c0_28, %c0_29, %c0_30, %c0_31] : memref<1x2x8x128xf32, #tpu.memory_space<vmem>>, vector<1x2x8x128xf32>
      tpu.vector_store %arg6[%c0_28, %c0_29, %c0_30, %c0_31], %50 {strides = array<i32>} : memref<1x2x8x128xf32, #tpu.memory_space<vmem>>, vector<1x2x8x128xf32>,
    } else {
    }
    %cst = arith.constant 0.000000e+00 : f32
    %3 = vector.broadcast %cst : f32 to vector<8x128xf32>
    %c0_i32_1 = arith.constant 0 : i32
    %c16_i32 = arith.constant 16 : i32
    %4 = arith.muli %c0_i32_1, %c16_i32 : i32
    %5 = tpu.assume_multiple %4, 16 : i32
    %6 = arith.index_cast %5 : i32 to index
    %c0 = arith.constant 0 : index
    %7 = vector.load %arg2[%6, %c0] : memref<16x128xf32, #tpu.memory_space<vmem>>, vector<16x128xf32>
    %8 = arith.index_cast %5 : i32 to index
    %c0_2 = arith.constant 0 : index
    %9 = vector.load %arg3[%8, %c0_2] : memref<16x128xf32, #tpu.memory_space<vmem>>, vector<16x128xf32>
    %10 = arith.index_cast %5 : i32 to index
    %c0_3 = arith.constant 0 : index
    %11 = vector.load %arg4[%10, %c0_3] : memref<16x128xf32, #tpu.memory_space<vmem>>, vector<16x128xf32>
    %12 = arith.index_cast %5 : i32 to index
    %c0_4 = arith.constant 0 : index
    %13 = vector.load %arg5[%12, %c0_4] : memref<16x128xf32, #tpu.memory_space<vmem>>, vector<16x128xf32>
    %14 = arith.mulf %7, %7 : vector<16x128xf32>
    %cst_5 = arith.constant 1.000000e+00 : f32
    %15 = vector.broadcast %cst_5 : f32 to vector<16x128xf32>
    %16 = arith.subf %15, %9 : vector<16x128xf32>
    %17 = arith.mulf %16, %16 : vector<16x128xf32>
    %cst_6 = arith.constant -7.500000e-01 : f32
    %18 = vector.broadcast %cst_6 : f32 to vector<16x128xf32>
    %19 = arith.mulf %18, %14 : vector<16x128xf32>
    %cst_7 = arith.constant 1.000000e+00 : f32
    %20 = vector.broadcast %cst_7 : f32 to vector<16x128xf32>
    %21 = arith.subf %20, %11 : vector<16x128xf32>
    %22 = arith.mulf %19, %21 : vector<16x128xf32>
    %cst_8 = arith.constant 1.000000e+00 : f32
    %23 = vector.broadcast %cst_8 : f32 to vector<16x128xf32>
    %24 = arith.subf %23, %7 : vector<16x128xf32>
    %25 = math.log %24 : vector<16x128xf32>
    %26 = arith.mulf %22, %25 : vector<16x128xf32>
    %cst_9 = arith.constant -2.500000e-01 : f32
    %27 = vector.broadcast %cst_9 : f32 to vector<16x128xf32>
    %28 = arith.mulf %27, %17 : vector<16x128xf32>
    %29 = arith.mulf %28, %13 : vector<16x128xf32>
    %30 = math.log %9 : vector<16x128xf32>
    %31 = arith.mulf %29, %30 : vector<16x128xf32>
    %32 = vector.shape_cast %26 : vector<16x128xf32> to vector<2x8x128xf32>
    %cst_10 = arith.constant dense<0.000000e+00> : vector<8x128xf32>
    %33 = vector.multi_reduction <add>, %32, %cst_10 [0] : vector<2x8x128xf32> to vector<8x128xf32>
    %34 = vector.shape_cast %31 : vector<16x128xf32> to vector<2x8x128xf32>
    %cst_11 = arith.constant dense<0.000000e+00> : vector<8x128xf32>
    %35 = vector.multi_reduction <add>, %34, %cst_11 [0] : vector<2x8x128xf32> to vector<8x128xf32>
    %36 = arith.addf %3, %33 : vector<8x128xf32>
    %37 = arith.addf %3, %35 : vector<8x128xf32>
    %c1_i32 = arith.constant 1 : i32
    %c0_12 = arith.constant 0 : index
    %c0_13 = arith.constant 0 : index
    %c0_14 = arith.constant 0 : index
    %c0_15 = arith.constant 0 : index
    %38 = vector.load %arg6[%c0_12, %c0_13, %c0_14, %c0_15] : memref<1x2x8x128xf32, #tpu.memory_space<vmem>>, vector<1x1x8x128xf32>
    %39 = vector.shape_cast %38 : vector<1x1x8x128xf32> to vector<8x128xf32>
    %40 = arith.addf %39, %36 : vector<8x128xf32>
    %c0_16 = arith.constant 0 : index
    %c0_17 = arith.constant 0 : index
    %c0_18 = arith.constant 0 : index
    %c0_19 = arith.constant 0 : index
    %41 = vector.load %arg6[%c0_16, %c0_17, %c0_18, %c0_19] : memref<1x2x8x128xf32, #tpu.memory_space<vmem>>, vector<1x1x8x128xf32>
    %42 = vector.shape_cast %41 : vector<1x1x8x128xf32> to vector<8x128xf32>
    %43 = vector.shape_cast %40 : vector<8x128xf32> to vector<1x1x8x128xf32>
    tpu.vector_store %arg6[%c0_16, %c0_17, %c0_18, %c0_19], %43 {strides = array<i32>} : memref<1x2x8x128xf32, #tpu.memory_space<vmem>>, vector<1x1x8x128xf32>,
    %c0_20 = arith.constant 0 : index
    %c1 = arith.constant 1 : index
    %c0_21 = arith.constant 0 : index
    %c0_22 = arith.constant 0 : index
    %44 = vector.load %arg6[%c0_20, %c1, %c0_21, %c0_22] : memref<1x2x8x128xf32, #tpu.memory_space<vmem>>, vector<1x1x8x128xf32>
    %45 = vector.shape_cast %44 : vector<1x1x8x128xf32> to vector<8x128xf32>
    %46 = arith.addf %45, %37 : vector<8x128xf32>
    %c0_23 = arith.constant 0 : index
    %c1_24 = arith.constant 1 : index
    %c0_25 = arith.constant 0 : index
    %c0_26 = arith.constant 0 : index
    %47 = vector.load %arg6[%c0_23, %c1_24, %c0_25, %c0_26] : memref<1x2x8x128xf32, #tpu.memory_space<vmem>>, vector<1x1x8x128xf32>
    %48 = vector.shape_cast %47 : vector<1x1x8x128xf32> to vector<8x128xf32>
    %49 = vector.shape_cast %46 : vector<8x128xf32> to vector<1x1x8x128xf32>
    tpu.vector_store %arg6[%c0_23, %c1_24, %c0_25, %c0_26], %49 {strides = array<i32>} : memref<1x2x8x128xf32, #tpu.memory_space<vmem>>, vector<1x1x8x128xf32>,
    return
  }
  func.func @transform_0(%arg0: i32, %arg1: i32) -> (i32, i32) {
    %c1_i32 = arith.constant 1 : i32
    %0 = arith.muli %arg0, %c1_i32 : i32
    %1 = arith.addi %0, %arg1 : i32
    %c0_i32 = arith.constant 0 : i32
    %c0_i32_0 = arith.constant 0 : i32
    return %1, %c0_i32 : i32, i32
  }
  func.func @transform_1(%arg0: i32, %arg1: i32) -> (i32, i32) {
    %c1_i32 = arith.constant 1 : i32
    %0 = arith.muli %arg0, %c1_i32 : i32
    %1 = arith.addi %0, %arg1 : i32
    %c0_i32 = arith.constant 0 : i32
    %c0_i32_0 = arith.constant 0 : i32
    return %1, %c0_i32 : i32, i32
  }
  func.func @transform_2(%arg0: i32, %arg1: i32) -> (i32, i32) {
    %c1_i32 = arith.constant 1 : i32
    %0 = arith.muli %arg0, %c1_i32 : i32
    %1 = arith.addi %0, %arg1 : i32
    %c0_i32 = arith.constant 0 : i32
    %c0_i32_0 = arith.constant 0 : i32
    return %1, %c0_i32 : i32, i32
  }
  func.func @transform_3(%arg0: i32, %arg1: i32) -> (i32, i32) {
    %c1_i32 = arith.constant 1 : i32
    %0 = arith.muli %arg0, %c1_i32 : i32
    %1 = arith.addi %0, %arg1 : i32
    %c0_i32 = arith.constant 0 : i32
    %c0_i32_0 = arith.constant 0 : i32
    return %1, %c0_i32 : i32, i32
  }
  func.func @transform_4(%arg0: i32, %arg1: i32) -> (i32, i32, i32, i32) {
    %c0_i32 = arith.constant 0 : i32
    %c0_i32_0 = arith.constant 0 : i32
    %c0_i32_1 = arith.constant 0 : i32
    %c0_i32_2 = arith.constant 0 : i32
    return %arg0, %c0_i32, %c0_i32_0, %c0_i32_1 : i32, i32, i32, i32
  }
}

</mosaic_0001>

<bundles_post_ra>
// kernel: tpu_custom_call.1
= control target key start
LH: loop header
LB: loop body
LE: loop exit
PB: predicated region body
PF: predicated region fallthrough
CT: control target
= control target key end

     0   :  { %9 = vsyncpa [#allocation3], 0  ;;  %s426_s0 = inlined_call_operand.hbm [shape: f32[16,128], index: 0, kind: input, shape index: {}]   ;;  %s427_s1 = inlined_call_operand.hbm [shape: f32[16,128], index: 1, kind: input, shape index: {}]   ;;  %s428_s2 = inlined_call_operand.hbm [shape: f32[16,128], index: 2, kind: input, shape index: {}]   ;;  %s429_s3 = inlined_call_operand.hbm [shape: f32[16,128], index: 3, kind: input, shape index: {}]   ;;  %s430_s4 = inlined_call_operand.hbm [shape: f32[1,2,8,128], index: 4, kind: output, shape index: {}]  }
   0x1   :  { %10 = vsyncpa [#allocation6], 0 }
   0x2   :  { %11 = vsyncpa [#allocation9], 0 }
   0x3   :  { %12 = vsyncpa [#allocation4], 0  ;;  %s305_s15 = smov [#allocation5]   ;;  %s306_s17 = smov [#allocation2]  }
   0x4   :  { %s38_s16 = sshll.u32 %s305_s15, 4  ;;  %s22_s18 = sshll.u32 %s306_s17, 4  ;;  %s39_s16 = int_to_ptr.vmem [resolvable:$true] %s38_s16  ;;  %s337_s18 = int_to_ptr.vmem [resolvable:$true] %s22_s18 }
   0x5   :  { %s187_s21 = scalar_lea.hbm %s427_s1, 256 }
   0x6   :  { %p188_p0 = scmp.ne.s32.totalorder %s427_s1, %s187_s21  ;;  %p191_p1 = scmp.lt.u32.totalorder %s187_s21, %s427_s1 }
   0x8   :  { %p193_p2 = pnand %p191_p1, %p188_p0 }
   0xa   :  { %196 = shalt.err (!%p193_p2)
}
   0xb   :  { %s197_s26 = scalar_lea.vmem %s39_s16, 256  ;;  %p202_p4 = scmp.lt.s32.totalorder %s39_s16, %s39_s16 }
   0xc   :  { %p198_p3 = scmp.ne.s32.totalorder %s39_s16, %s197_s26  ;;  %p203_p5 = scmp.lt.s32.totalorder %s197_s26, %s197_s26 }
   0xe   :  { %p204_p6 = por %p203_p5, %p202_p4 }
  0x10   :  { %p205_p7 = pnand %p204_p6, %p198_p3 }
  0x12   :  { %208 = shalt.err (!%p205_p7)
}
  0x13   :  { %s307_s27 = smov 128   ;;  %s308_s28 = smov 8  }
  0x14   :  { %44 = dma.hbm_to_vmem [thread:$0]  %s427_s1, 256, %s39_s16, [#allocation6], %s307_s27, %s307_s27, %s308_s28  }
  0x15   :  { %s209_s7 = scalar_lea.hbm %s426_s0, 256 }
  0x16   :  { %p210_p8 = scmp.ne.s32.totalorder %s426_s0, %s209_s7  ;;  %p213_p9 = scmp.lt.u32.totalorder %s209_s7, %s426_s0 }
  0x18   :  { %p215_p10 = pnand %p213_p9, %p210_p8 }
  0x1a   :  { %218 = shalt.err (!%p215_p10)
}
  0x1b   :  { %s219_s12 = scalar_lea.vmem %s337_s18, 256  ;;  %p224_p12 = scmp.lt.s32.totalorder %s337_s18, %s337_s18 }
  0x1c   :  { %p220_p11 = scmp.ne.s32.totalorder %s337_s18, %s219_s12  ;;  %p225_p13 = scmp.lt.s32.totalorder %s219_s12, %s219_s12 }
  0x1e   :  { %p226_p0 = por %p225_p13, %p224_p12 }
  0x20   :  { %p227_p1 = pnand %p226_p0, %p220_p11 }
  0x22   :  { %230 = shalt.err (!%p227_p1)
}
  0x23   :  { %28 = dma.hbm_to_vmem [thread:$0]  %s426_s0, 256, %s337_s18, [#allocation3], %s307_s27, %s307_s27, %s308_s28  }
  0x24   :  { %s309_s14 = smov [#allocation7]   ;;  %s310_s16 = smov [#allocation8]  }
  0x25   :  { %s54_s15 = sshll.u32 %s309_s14, 4  ;;  %s70_s17 = sshll.u32 %s310_s16, 4  ;;  %s55_s15 = int_to_ptr.vmem [resolvable:$true] %s54_s15  ;;  %s374_s17 = int_to_ptr.vmem [resolvable:$true] %s70_s17 }
  0x26   :  { %s231_s21 = scalar_lea.hbm %s428_s2, 256 }
  0x27   :  { %p232_p2 = scmp.ne.s32.totalorder %s428_s2, %s231_s21  ;;  %p235_p3 = scmp.lt.u32.totalorder %s231_s21, %s428_s2 }
  0x29   :  { %p237_p4 = pnand %p235_p3, %p232_p2 }
  0x2b   :  { %240 = shalt.err (!%p237_p4)
}
  0x2c   :  { %s241_s0 = scalar_lea.vmem %s55_s15, 256  ;;  %p246_p6 = scmp.lt.s32.totalorder %s55_s15, %s55_s15 }
  0x2d   :  { %p242_p5 = scmp.ne.s32.totalorder %s55_s15, %s241_s0  ;;  %p247_p7 = scmp.lt.s32.totalorder %s241_s0, %s241_s0 }
  0x2f   :  { %p248_p8 = por %p247_p7, %p246_p6 }
  0x31   :  { %p249_p9 = pnand %p248_p8, %p242_p5 }
  0x33   :  { %252 = shalt.err (!%p249_p9)
}
  0x34   :  { %60 = dma.hbm_to_vmem [thread:$0]  %s428_s2, 256, %s55_s15, [#allocation6], %s307_s27, %s307_s27, %s308_s28  }
  0x35   :  { %s253_s5 = scalar_lea.hbm %s429_s3, 256 }
  0x36   :  { %p254_p10 = scmp.ne.s32.totalorder %s429_s3, %s253_s5  ;;  %p257_p11 = scmp.lt.u32.totalorder %s253_s5, %s429_s3 }
  0x38   :  { %p259_p12 = pnand %p257_p11, %p254_p10 }
  0x3a   :  { %262 = shalt.err (!%p259_p12)
}
  0x3b   :  { %s263_s10 = scalar_lea.vmem %s374_s17, 256  ;;  %p268_p0 = scmp.lt.s32.totalorder %s374_s17, %s374_s17 }
  0x3c   :  { %p264_p13 = scmp.ne.s32.totalorder %s374_s17, %s263_s10  ;;  %p269_p1 = scmp.lt.s32.totalorder %s263_s10, %s263_s10 }
  0x3e   :  { %p270_p2 = por %p269_p1, %p268_p0 }
  0x40   :  { %p271_p3 = pnand %p270_p2, %p264_p13 }
  0x42   :  { %274 = shalt.err (!%p271_p3)
}
  0x43   :  { %76 = dma.hbm_to_vmem [thread:$0]  %s429_s3, 256, %s374_s17, [#allocation9], %s307_s27, %s307_s27, %s308_s28  }
  0x44   :  { %297 = dma.done.wait [#allocation3], 256  }
  0x45   :  { %298 = vsyncadd [#allocation3], 4294967040 }
  0x46   :  { %299 = dma.done.wait [#allocation6], 512  }
  0x47   :  { %300 = vsyncadd [#allocation6], 4294966784 }
  0x48   :  { %301 = dma.done.wait [#allocation9], 256  }
  0x49   :  { %302 = vsyncadd [#allocation9], 4294967040  ;;  %v103_v0 = vld [vmem:[#allocation2] sm:$0xff]  ;;  %v104_v1 = vld [vmem:[#allocation2 + $0x8] sm:$0xff]  ;;  %s311_s3 = smov [#allocation10]  }
  0x4a   :  { %v123_v2 = vsub.f32 1.0, %v103_v0  ;;  %v105_v3 = vld [vmem:[#allocation5] sm:$0xff]  ;;  %v124_v4 = vsub.f32 1.0, %v104_v1  ;;  %v106_v5 = vld [vmem:[#allocation5 + $0x8] sm:$0xff]  ;;  %v111_v8 = vmul.f32 %v103_v0, %v103_v0  ;;  %v107_v9 = vld [vmem:[#allocation7] sm:$0xff]  ;;  %v112_v10 = vmul.f32 %v104_v1, %v104_v1  ;;  %s157_s12 = sshll.u32 %s311_s3, 4  ;;  %s158_s12 = int_to_ptr.vmem [resolvable:$true] %s157_s12 }
  0x4b   :  { %v113_v6 = vsub.f32 1.0, %v105_v3  ;;  %v114_v7 = vsub.f32 1.0, %v106_v5  ;;  %v108_v11 = vld [vmem:[#allocation7 + $0x8] sm:$0xff]  ;;  %v119_v15 = vsub.f32 1.0, %v107_v9  ;;  %v109_v19 = vld [vmem:[#allocation8] sm:$0xff]  ;;  %v110_v22 = vld [vmem:[#allocation8 + $0x8] sm:$0xff]  ;;  %p280_p5 = scmp.lt.s32.totalorder %s158_s12, %s158_s12 }
  0x4c   :  { %179 = vlog2.f32 %v123_v2  ;;  %v117_v14 = vmul.f32 -0.75, %v111_v8  ;;  %v118_v16 = vmul.f32 -0.75, %v112_v10  ;;  %v120_v17 = vsub.f32 1.0, %v108_v11  ;;  %s275_s1 = scalar_lea.vmem %s158_s12, 256 }
  0x4d   :  { %181 = vlog2.f32 %v124_v4  ;;  %v115_v12 = vmul.f32 %v113_v6, %v113_v6  ;;  %v116_v13 = vmul.f32 %v114_v7, %v114_v7  ;;  %p276_p4 = scmp.ne.s32.totalorder %s158_s12, %s275_s1  ;;  %p281_p6 = scmp.lt.s32.totalorder %s275_s1, %s275_s1 }
  0x4e   :  { %183 = vlog2.f32 %v105_v3  ;;  %v121_v21 = vmul.f32 %v119_v15, %v117_v14  ;;  %v122_v24 = vmul.f32 %v120_v17, %v118_v16 }
  0x4f   :  { %185 = vlog2.f32 %v106_v5  ;;  %v131_v18 = vmul.f32 -0.25, %v115_v12  ;;  %v132_v20 = vmul.f32 -0.25, %v116_v13  ;;  %p282_p7 = por %p281_p6, %p280_p5 }
  0x51   :  { %v133_v27 = vmul.f32 %v131_v18, %v109_v19  ;;  %v134_v30 = vmul.f32 %v132_v20, %v110_v22  ;;  %p283_p8 = pnand %p282_p7, %p276_p4 }
  0x56   :  { %v180_v23 = vpop.eup %179 }
  0x57   :  { %v182_v25 = vpop.eup %181  ;;  %v126_v26 = vmul.f32 0.6931472, %v180_v23 }
  0x58   :  { %v184_v28 = vpop.eup %183  ;;  %v128_v29 = vmul.f32 0.6931472, %v182_v25 }
  0x59   :  { %v186_v31 = vpop.eup %185  ;;  %v129_v32 = vmul.f32 %v126_v26, %v121_v21  ;;  %v136_v33 = vmul.f32 0.6931472, %v184_v28 }
  0x5a   :  { %v130_v34 = vmul.f32 %v128_v29, %v122_v24  ;;  %v138_v35 = vmul.f32 0.6931472, %v186_v31 }
  0x5b   :  { %v139_v36 = vmul.f32 %v136_v33, %v133_v27 }
  0x5c   :  { %v141_v37 = vadd.f32 %v130_v34, %v129_v32  ;;  %v140_v38 = vmul.f32 %v138_v35, %v134_v30 }
  0x5e   :  { %v142_v39 = vadd.f32 %v140_v38, %v139_v36  ;;  %147 = vst [vmem:[#allocation10] sm:$0xff] %v141_v37 }
  0x60   :  { %151 = vst [vmem:[#allocation10 + $0x8] sm:$0xff] %v142_v39 }
  0x61   :  { %286 = shalt.err (!%p283_p8)
}
  0x62   :  { %s287_s15 = scalar_lea.hbm %s430_s4, 256 }
  0x63   :  { %p288_p9 = scmp.ne.s32.totalorder %s430_s4, %s287_s15  ;;  %p291_p10 = scmp.lt.u32.totalorder %s287_s15, %s430_s4 }
  0x65   :  { %p293_p11 = pnand %p291_p10, %p288_p9 }
  0x67   :  { %296 = shalt.err (!%p293_p11)
}
  0x68   :  { %163 = dma.vmem_to_hbm [thread:$0]  %s158_s12, 256, %s430_s4, [#allocation4], %s307_s27, %s307_s27, %s308_s28  }
  0x69   :  { %303 = dma.done.wait [#allocation4], 256  }
  0x6a   :  { %304 = vsyncadd [#allocation4], 4294967040 }
  0x6b   :  { %167 = vsyncpa [#allocation3], 1 }
  0x6c   :  { %168 = vsyncpa [#allocation6], 1 }
  0x6d   :  { %169 = vsyncpa [#allocation9], 1 }
  0x6e   :  { %170 = vsyncpa [#allocation4], 1 }

</bundles_post_ra>
